<compile_context>
chip_gen: v6e
topology: v6e:2x2x1
jax: 0.10.0
libtpu: 0.0.40
codegen_flags: <defaults>
</compile_context>

<pallas_src>
import jax
import jax.numpy as jnp
from jax.experimental import pallas as pl
from jax.experimental.pallas import tpu as pltpu


def _matmul_bias_kernel(x_ref, w_ref, b_ref, o_ref, acc_ref):
    # x_ref: (tm, tk) activation tile
    # w_ref: (tk, tn) weight tile, already (in, out) layout
    # b_ref: (1, tn)  bias slice (block index independent of k -> stays resident)
    # o_ref: (tm, tn) output tile
    # acc_ref: (tm, tn) f32 accumulator scratch
    k = pl.program_id(2)

    @pl.when(k == 0)
    def _():
        acc_ref[...] = jnp.zeros_like(acc_ref)

    acc_ref[...] += jnp.dot(
        x_ref[...], w_ref[...], preferred_element_type=jnp.float32
    )

    @pl.when(k == pl.num_programs(2) - 1)
    def _():
        o_ref[...] = (acc_ref[...] + b_ref[...]).astype(o_ref.dtype)


def _pick_tile(dim, candidates):
    """Largest candidate that evenly divides `dim`, else the full dim."""
    for c in candidates:
        if c <= dim and dim % c == 0:
            return c
    return dim


def _linear(x, w_t, bias):
    """y = x @ w_t + bias, tiled over (M, N, K) with a K accumulator.

    x: (M, E), w_t: (E, N) (already transposed from PyTorch layout), bias: (N,).
    Returns (M, N) in x.dtype.
    """
    M, E = x.shape
    _, N = w_t.shape
    dtype = x.dtype

    tm = _pick_tile(M, (512, 256, 128, 64, 32, 16, 8))
    tn = _pick_tile(N, (512, 256, 128))
    tk = _pick_tile(E, (512, 256, 128))

    grid = (M // tm, N // tn, E // tk)

    itemsize = x.dtype.itemsize
    cost = pl.CostEstimate(
        flops=2 * M * N * E,
        transcendentals=0,
        bytes_accessed=(M * E + E * N + M * N + N) * itemsize,
    )

    return pl.pallas_call(
        _matmul_bias_kernel,
        out_shape=jax.ShapeDtypeStruct((M, N), dtype),
        grid_spec=pltpu.PrefetchScalarGridSpec(
            num_scalar_prefetch=0,
            grid=grid,
            in_specs=[
                pl.BlockSpec((tm, tk), lambda i, j, k: (i, k)),  # activations
                pl.BlockSpec((tk, tn), lambda i, j, k: (k, j)),  # weight tile
                pl.BlockSpec((1, tn), lambda i, j, k: (0, j)),   # bias slice
            ],
            out_specs=pl.BlockSpec((tm, tn), lambda i, j, k: (i, j)),
            scratch_shapes=[pltpu.VMEM((tm, tn), jnp.float32)],
        ),
        compiler_params=pltpu.CompilerParams(
            dimension_semantics=("parallel", "parallel", "arbitrary"),
            vmem_limit_bytes=32 * 1024 * 1024,
        ),
        cost_estimate=cost,
    )(x, w_t, bias.reshape(1, N))


def multi_head_projection(Q, K, V, weights, biases, n_heads):
    """weights: (3, E, E) PyTorch convention (out, in); biases: (3, E).

    Returns (query, key, value), each (B, n_heads, S, E // n_heads).
    """
    B, S, E = Q.shape
    assert E % n_heads == 0
    P = E // n_heads
    M = B * S

    def split_heads(y):
        # Lane-dense kernel output -> cheap layout glue left to XLA.
        return jnp.transpose(y.reshape(B, S, n_heads, P), (0, 2, 1, 3))

    if (Q is K) and (K is V):
        # Self-attention: fuse the 3 projections into one matmul (N = 3E) so
        # the activation matrix is read from HBM once instead of three times.
        w_cat = jnp.concatenate([weights[p].T for p in range(3)], axis=1)
        b_cat = jnp.concatenate([biases[p] for p in range(3)], axis=0)
        y = _linear(Q.reshape(M, E), w_cat, b_cat)
        return tuple(split_heads(y[:, p * E:(p + 1) * E]) for p in range(3))

    outs = []
    for p, X in enumerate((Q, K, V)):
        # One-time weight transpose to (in, out); amortizes over every call and
        # guarantees no per-step relayout inside the kernel's inner loop.
        y = _linear(X.reshape(M, E), weights[p].T, biases[p])
        outs.append(split_heads(y))
    return tuple(outs)


def reference(Q, K, V, weights, biases, n_heads):
    B, S, E = Q.shape
    P = E // n_heads
    outs = []
    for p, X in enumerate((Q, K, V)):
        y = X @ weights[p].T + biases[p]
        y = y.reshape(B, S, n_heads, P)
        y = jnp.transpose(y, (0, 2, 1, 3))
        outs.append(y)
    return tuple(outs)


if __name__ == "__main__":
    B, S, E, H = 2, 8, 32, 4

    key = jax.random.PRNGKey(0)
    kq, kk, kv, kw, kb = jax.random.split(key, 5)

    Q = jax.random.normal(kq, (B, S, E), dtype=jnp.float32)
    K = jax.random.normal(kk, (B, S, E), dtype=jnp.float32)
    V = jax.random.normal(kv, (B, S, E), dtype=jnp.float32)

    # Parameters for the 3 nn.Linear(E, E) layers
    # (PyTorch convention: weight (out_features, in_features), bias (out_features,))
    bound = 1.0 / jnp.sqrt(E)
    weights = jax.random.uniform(kw, (3, E, E), minval=-bound, maxval=bound,
                                 dtype=jnp.float32)
    biases = jax.random.uniform(kb, (3, E), minval=-bound, maxval=bound,
                                dtype=jnp.float32)

    q_out, k_out, v_out = multi_head_projection(Q, K, V, weights, biases, H)
    jax.block_until_ready((q_out, k_out, v_out))

    q_ref, k_ref, v_ref = reference(Q, K, V, weights, biases, H)
    assert q_out.shape == (B, H, S, E // H)
    assert jnp.allclose(q_out, q_ref, atol=1e-4, rtol=1e-4)
    assert jnp.allclose(k_out, k_ref, atol=1e-4, rtol=1e-4)
    assert jnp.allclose(v_out, v_ref, atol=1e-4, rtol=1e-4)

    # Also exercise the fused self-attention (Q is K is V) path.
    sq, sk, sv = multi_head_projection(Q, Q, Q, weights, biases, H)
    jax.block_until_ready((sq, sk, sv))
    rq, rk, rv = reference(Q, Q, Q, weights, biases, H)
    assert jnp.allclose(sq, rq, atol=1e-4, rtol=1e-4)
    assert jnp.allclose(sk, rk, atol=1e-4, rtol=1e-4)
    assert jnp.allclose(sv, rv, atol=1e-4, rtol=1e-4)

    print("KERNEL_OK")
</pallas_src>

<mosaic_0001>
module attributes {stable_mosaic.version = 11 : i64} {
  func.func @_matmul_bias_kernel(%arg0: i32, %arg1: i32, %arg2: i32, %arg3: memref<16x32xf32, #tpu.memory_space<vmem>>, %arg4: memref<32x32xf32, #tpu.memory_space<vmem>>, %arg5: memref<1x32xf32, #tpu.memory_space<vmem>>, %arg6: memref<16x32xf32, #tpu.memory_space<vmem>>, %arg7: memref<16x32xf32, #tpu.memory_space<vmem>>) attributes {dimension_semantics = [#tpu.dimension_semantics<parallel>, #tpu.dimension_semantics<parallel>, #tpu.dimension_semantics<arbitrary>], iteration_bounds = array<i64: 1, 1, 1>, scalar_prefetch = 0 : i64, scratch_operands = 1 : i64, tpu.core_type = #tpu.core_type<tc>, window_params = [{transform_indices = @transform_0, window_bounds = array<i64: 16, 32>}, {transform_indices = @transform_1, window_bounds = array<i64: 32, 32>}, {transform_indices = @transform_2, window_bounds = array<i64: 1, 32>}, {transform_indices = @transform_3, window_bounds = array<i64: 16, 32>}]} {
    %c0_i32 = arith.constant 0 : i32
    %0 = arith.cmpi eq, %arg2, %c0_i32 : i32
    %1 = arith.extui %0 : i1 to i32
    %c0_i32_0 = arith.constant 0 : i32
    %2 = arith.cmpi ne, %1, %c0_i32_0 : i32
    scf.if %2 {
      %cst_10 = arith.constant 0.000000e+00 : f32
      %12 = vector.broadcast %cst_10 : f32 to vector<16x32xf32>
      %c0_11 = arith.constant 0 : index
      %c0_12 = arith.constant 0 : index
      %13 = vector.load %arg7[%c0_11, %c0_12] : memref<16x32xf32, #tpu.memory_space<vmem>>, vector<16x32xf32>
      tpu.vector_store %arg7[%c0_11, %c0_12], %12 {strides = array<i32>} : memref<16x32xf32, #tpu.memory_space<vmem>>, vector<16x32xf32>,
    } else {
    }
    %c0 = arith.constant 0 : index
    %c0_1 = arith.constant 0 : index
    %3 = vector.load %arg7[%c0, %c0_1] : memref<16x32xf32, #tpu.memory_space<vmem>>, vector<16x32xf32>
    %c0_2 = arith.constant 0 : index
    %c0_3 = arith.constant 0 : index
    %4 = vector.load %arg3[%c0_2, %c0_3] : memref<16x32xf32, #tpu.memory_space<vmem>>, vector<16x32xf32>
    %c0_4 = arith.constant 0 : index
    %c0_5 = arith.constant 0 : index
    %5 = vector.load %arg4[%c0_4, %c0_5] : memref<32x32xf32, #tpu.memory_space<vmem>>, vector<32x32xf32>
    %cst = arith.constant dense<0.000000e+00> : vector<16x32xf32>
    %6 = tpu.matmul %4, %5, %cst {dimension_numbers = #tpu.dot_dimension_numbers<[1], [0], [0], [1], [0, 0, 1, 1], [], []>} : vector<16x32xf32>, vector<32x32xf32>, vector<16x32xf32> -> vector<16x32xf32>
    %7 = arith.addf %3, %6 : vector<16x32xf32>
    %c0_6 = arith.constant 0 : index
    %c0_7 = arith.constant 0 : index
    %8 = vector.load %arg7[%c0_6, %c0_7] : memref<16x32xf32, #tpu.memory_space<vmem>>, vector<16x32xf32>
    tpu.vector_store %arg7[%c0_6, %c0_7], %7 {strides = array<i32>} : memref<16x32xf32, #tpu.memory_space<vmem>>, vector<16x32xf32>,
    %c0_i32_8 = arith.constant 0 : i32
    %9 = arith.cmpi eq, %arg2, %c0_i32_8 : i32
    %10 = arith.extui %9 : i1 to i32
    %c0_i32_9 = arith.constant 0 : i32
    %11 = arith.cmpi ne, %10, %c0_i32_9 : i32
    scf.if %11 {
      %c0_10 = arith.constant 0 : index
      %c0_11 = arith.constant 0 : index
      %12 = vector.load %arg7[%c0_10, %c0_11] : memref<16x32xf32, #tpu.memory_space<vmem>>, vector<16x32xf32>
      %c0_12 = arith.constant 0 : index
      %c0_13 = arith.constant 0 : index
      %13 = vector.load %arg5[%c0_12, %c0_13] : memref<1x32xf32, #tpu.memory_space<vmem>>, vector<1x32xf32>
      %14 = vector.broadcast %13 : vector<1x32xf32> to vector<16x32xf32>
      %15 = arith.addf %12, %14 : vector<16x32xf32>
      %c0_14 = arith.constant 0 : index
      %c0_15 = arith.constant 0 : index
      %16 = vector.load %arg6[%c0_14, %c0_15] : memref<16x32xf32, #tpu.memory_space<vmem>>, vector<16x32xf32>
      tpu.vector_store %arg6[%c0_14, %c0_15], %15 {strides = array<i32>} : memref<16x32xf32, #tpu.memory_space<vmem>>, vector<16x32xf32>,
    } else {
    }
    return
  }
  func.func @transform_0(%arg0: i32, %arg1: i32, %arg2: i32) -> (i32, i32) {
    %c0_i32 = arith.constant 0 : i32
    return %arg0, %arg2 : i32, i32
  }
  func.func @transform_1(%arg0: i32, %arg1: i32, %arg2: i32) -> (i32, i32) {
    %c0_i32 = arith.constant 0 : i32
    return %arg2, %arg1 : i32, i32
  }
  func.func @transform_2(%arg0: i32, %arg1: i32, %arg2: i32) -> (i32, i32) {
    %c0_i32 = arith.constant 0 : i32
    %c0_i32_0 = arith.constant 0 : i32
    return %c0_i32, %arg1 : i32, i32
  }
  func.func @transform_3(%arg0: i32, %arg1: i32, %arg2: i32) -> (i32, i32) {
    %c0_i32 = arith.constant 0 : i32
    return %arg0, %arg1 : i32, i32
  }
}

</mosaic_0001>

<bundles_post_ra>
// kernel: tpu_custom_call.1
= control target key start
LH: loop header
LB: loop body
LE: loop exit
PB: predicated region body
PF: predicated region fallthrough
CT: control target
= control target key end

     0   :  { %8 = vsyncpa [#allocation4], 0  ;;  %s325_s0 = inlined_call_operand.hbm [shape: f32[16,32], index: 0, kind: input, shape index: {}]   ;;  %s326_s1 = inlined_call_operand.hbm [shape: f32[32,32], index: 1, kind: input, shape index: {}]   ;;  %s327_s2 = inlined_call_operand.vmem [shape: f32[1,32], index: 2, kind: input, shape index: {}]   ;;  %s328_s3 = inlined_call_operand.hbm [shape: f32[16,32], index: 3, kind: output, shape index: {}]  }
   0x1   :  { %9 = vsyncpa [#allocation7], 0 }
   0x2   :  { %10 = vsyncpa [#allocation5], 0  ;;  %s270_s12 = smov [#allocation3]  }
   0x3   :  { %s16_s13 = sshll.u32 %s270_s12, 4  ;;  %s17_s13 = int_to_ptr.vmem [resolvable:$true] %s16_s13 }
   0x4   :  { %s212_s14 = scalar_lea.vmem %s17_s13, 256  ;;  %p217_p1 = scmp.lt.s32.totalorder %s17_s13, %s17_s13 }
   0x5   :  { %p213_p0 = scmp.ne.s32.totalorder %s17_s13, %s212_s14  ;;  %p218_p2 = scmp.lt.s32.totalorder %s212_s14, %s212_s14 }
   0x7   :  { %p219_p3 = por %p218_p2, %p217_p1 }
   0x9   :  { %p220_p4 = pnand %p219_p3, %p213_p0 }
   0xb   :  { %223 = shalt.err (!%p220_p4)
}
   0xc   :  { %s271_s15 = smov 128   ;;  %s272_s16 = smov 8  }
   0xd   :  { %22 = dma.hbm_to_vmem [thread:$0]  %s325_s0, 256, %s17_s13, [#allocation4], %s271_s15, %s271_s15, %s272_s16  }
   0xe   :  { %s273_s19 = smov [#allocation6]  }
   0xf   :  { %s28_s20 = sshll.u32 %s273_s19, 4  ;;  %s29_s20 = int_to_ptr.vmem [resolvable:$true] %s28_s20 }
  0x10   :  { %s232_s21 = scalar_lea.vmem %s29_s20, 512  ;;  %p237_p6 = scmp.lt.s32.totalorder %s29_s20, %s29_s20 }
  0x11   :  { %p233_p5 = scmp.ne.s32.totalorder %s29_s20, %s232_s21  ;;  %p238_p7 = scmp.lt.s32.totalorder %s232_s21, %s232_s21 }
  0x13   :  { %p239_p8 = por %p238_p7, %p237_p6 }
  0x15   :  { %p240_p9 = pnand %p239_p8, %p233_p5 }
  0x17   :  { %243 = shalt.err (!%p240_p9)
}
  0x18   :  { %34 = dma.hbm_to_vmem [thread:$0]  %s326_s1, 512, %s29_s20, [#allocation7], %s271_s15, %s271_s15, %s272_s16  }
  0x19   :  { %264 = dma.done.wait [#allocation4], 256  }
  0x1a   :  { %265 = vsyncadd [#allocation4], 4294967040 }
  0x1b   :  { %266 = dma.done.wait [#allocation7], 512  }
  0x1c   :  { %267 = vsyncadd [#allocation7], 4294966784  ;;  %vm47_vm0 = vcmask 261120   ;;  %v274_v0 = vmov 0.0   ;;  %v57_v1 = vld [vmem:[#allocation6 + $0x18] sm:$0xff]  ;;  %v56_v2 = vld [vmem:[#allocation6 + $0x10] sm:$0xff] }
  0x1d   :  { %49 = vst.msk [vmem:[#allocation2 + $0x8] sm:$0xff] %vm47_vm0, %v274_v0  ;;  %48 = vst.msk [vmem:[#allocation2] sm:$0xff] %vm47_vm0, %v274_v0  ;;  %187 = vmatprep.subr.mxu0 %v57_v1  ;;  %v52_v3 = vld [vmem:[#allocation3] sm:$0xff]  ;;  %v55_v4 = vld [vmem:[#allocation6 + $0x8] sm:$0xff]  ;;  %s275_s24 = smov [#allocation8]  }
  0x1e   :  { %188 = vmatpush3.msra.mxu0 %v57_v1  ;;  %195 = vmatprep.mubr.msk.f32.mxu0 %vm47_vm0, %v52_v3  ;;  %v54_v5 = vld [vmem:[#allocation6] sm:$0xff]  ;;  %v53_v6 = vld [vmem:[#allocation3 + $0x8] sm:$0xff]  ;;  %s165_s25 = sshll.u32 %s275_s24, 4  ;;  %s166_s25 = int_to_ptr.vmem [resolvable:$true] %s165_s25 }
  0x1f   :  { %189 = vmatprep.subr.mxu0 %v56_v2  ;;  %v180_v13 = vld [vmem:[%s327_s2] ss:$0 sm:$0xff]  ;;  %s244_s26 = scalar_lea.vmem %s166_s25, 256  ;;  %p249_p11 = scmp.lt.s32.totalorder %s166_s25, %s166_s25 }
  0x20   :  { %190 = vmatpush3.msra.mxu0 %v56_v2  ;;  %p245_p10 = scmp.ne.s32.totalorder %s166_s25, %s244_s26  ;;  %p250_p12 = scmp.lt.s32.totalorder %s244_s26, %s244_s26 }
  0x21   :  { %191 = vmatprep.subr.mxu0 %v55_v4 }
  0x22   :  { %192 = vmatpush3.msra.mxu0 %v55_v4  ;;  %p251_p13 = por %p250_p12, %p249_p11 }
  0x23   :  { %193 = vmatprep.subr.mxu0 %v54_v5 }
  0x24   :  { %194 = vmatpush3.msra.mxu0 %v54_v5  ;;  %v51_v7 = vld [vmem:[#allocation2 + $0x8] sm:$0xff]  ;;  %v50_v9 = vld [vmem:[#allocation2] sm:$0xff]  ;;  %p252_p0 = pnand %p251_p13, %p245_p10 }
  0x25   :  { %196 = vmatmul.mubr.msk.f32.vlgmr.msra.gmra.mxu0 %vm47_vm0, %v53_v6 }
  0xe5   :  { %v197_v8 = vpop.f32.mrf.mxu0 }
  0xe6   :  { %v141_v10 = vadd.f32 %v197_v8, %v51_v7 }
  0xe7   :  { %v131_v11 = vpop.f32.mrf.mxu0 }
  0xe8   :  { %143 = vst.msk [vmem:[#allocation2 + $0x8] sm:$0xff] %vm47_vm0, %v141_v10  ;;  %v140_v12 = vadd.f32 %v131_v11, %v50_v9 }
  0xea   :  { %142 = vst.msk [vmem:[#allocation2] sm:$0xff] %vm47_vm0, %v140_v12 }
  0xef   :  { %v148_v14 = vld [vmem:[#allocation2 + $0x8] sm:$0xff] }
  0xf0   :  { %v157_v15 = vadd.f32 %v180_v13, %v148_v14 }
  0xf1   :  { %v147_v16 = vld [vmem:[#allocation2] sm:$0xff] }
  0xf2   :  { %v156_v17 = vadd.f32 %v180_v13, %v147_v16  ;;  %159 = vst.msk [vmem:[#allocation8 + $0x8] sm:$0xff] %vm47_vm0, %v157_v15 }
  0xf4   :  { %158 = vst.msk [vmem:[#allocation8] sm:$0xff] %vm47_vm0, %v156_v17 }
  0xf5   :  { %255 = shalt.err (!%p252_p0)
}
  0xf6   :  { %171 = dma.vmem_to_hbm [thread:$0]  %s166_s25, 256, %s328_s3, [#allocation5], %s271_s15, %s271_s15, %s272_s16  }
  0xf7   :  { %268 = dma.done.wait [#allocation5], 256  }
  0xf8   :  { %269 = vsyncadd [#allocation5], 4294967040 }
  0xf9   :  { %175 = vsyncpa [#allocation4], 1 }
  0xfa   :  { %176 = vsyncpa [#allocation7], 1 }
  0xfb   :  { %177 = vsyncpa [#allocation5], 1 }

</bundles_post_ra>
